<compile_context>
chip_gen: v7x
topology: tpu7x:2x2x1
jax: 0.10.0
libtpu: 0.0.40
codegen_flags: <defaults>
</compile_context>

<pallas_src>
import jax
import jax.numpy as jnp
from jax.experimental import pallas as pl
from jax.experimental.pallas import tpu as pltpu


def _fused_addmm_kernel(x1_ref, x2_ref, w_ref, bias_ref, o_ref, acc_ref):
    k = pl.program_id(2)

    # Initialize the accumulator with the bias on the first K step
    # (the bias tile is resident across K, so it is only DMA'd once).
    @pl.when(k == 0)
    def _():
        acc_ref[...] = bias_ref[...].astype(jnp.float32)

    # One MXU matmul instead of two: (x1 + x2) @ inp1.
    s = x1_ref[...] + x2_ref[...]                       # VPU add, free slot
    acc_ref[...] += jnp.dot(s, w_ref[...],
                            preferred_element_type=jnp.float32)

    @pl.when(k == pl.num_programs(2) - 1)
    def _():
        o_ref[...] = acc_ref[...].astype(o_ref.dtype)


def model_forward(x1, x2, inp1, inp2, *, tm=256, tn=256, tk=512):
    M, K = x1.shape
    K2, N = inp1.shape
    assert x2.shape == (M, K) and K2 == K and inp2.shape == (M, N)

    def rup(a, b):
        return (a + b - 1) // b * b

    # Tile sizes: never larger than the (lane-dense) padded problem.
    tm = min(tm, rup(M, 8))
    tn = min(tn, rup(N, 128))
    tk = min(tk, rup(K, 128))

    # Pad every operand to a multiple of its tile (zero padding is exact:
    # zero rows/cols contribute nothing to the matmul, and the output is
    # sliced back afterwards).
    Mp, Kp, Np = rup(M, tm), rup(K, tk), rup(N, tn)

    def pad2(a, r, c):
        return jnp.pad(a, ((0, r - a.shape[0]), (0, c - a.shape[1])))

    x1p = pad2(x1, Mp, Kp)
    x2p = pad2(x2, Mp, Kp)
    wp = pad2(inp1, Kp, Np)
    bp = pad2(inp2, Mp, Np)

    grid = (Mp // tm, Np // tn, Kp // tk)

    out = pl.pallas_call(
        _fused_addmm_kernel,
        out_shape=jax.ShapeDtypeStruct((Mp, Np), x1.dtype),
        grid_spec=pltpu.PrefetchScalarGridSpec(
            num_scalar_prefetch=0,
            grid=grid,
            in_specs=[
                pl.BlockSpec((tm, tk), lambda i, j, k: (i, k)),   # x1
                pl.BlockSpec((tm, tk), lambda i, j, k: (i, k)),   # x2
                pl.BlockSpec((tk, tn), lambda i, j, k: (k, j)),   # inp1
                pl.BlockSpec((tm, tn), lambda i, j, k: (i, j)),   # inp2 (bias)
            ],
            out_specs=pl.BlockSpec((tm, tn), lambda i, j, k: (i, j)),
            scratch_shapes=[pltpu.VMEM((tm, tn), jnp.float32)],
        ),
        compiler_params=pltpu.CompilerParams(
            dimension_semantics=("parallel", "parallel", "arbitrary")),
    )(x1p, x2p, wp, bp)

    return out[:M, :N]


if __name__ == "__main__":
    # Small but consistent shapes implied by the forward pass.
    M, K, N = 8, 16, 32
    key = jax.random.PRNGKey(0)
    k1, k2, k3, k4 = jax.random.split(key, 4)
    x1 = jax.random.normal(k1, (M, K), dtype=jnp.float32)
    x2 = jax.random.normal(k2, (M, K), dtype=jnp.float32)
    inp1 = jax.random.normal(k3, (K, N), dtype=jnp.float32)
    inp2 = jax.random.normal(k4, (M, N), dtype=jnp.float32)

    out = model_forward(x1, x2, inp1, inp2)
    out = jax.block_until_ready(out)

    # Reference check in plain JAX (same semantics as the torch module).
    ref = x1 @ inp1 + x2 @ inp1 + inp2
    # Note: (x1+x2)@inp1 factoring changes f32 rounding order slightly.
    assert jnp.allclose(out, ref, atol=1e-4, rtol=1e-5), "mismatch vs reference"

    print("KERNEL_OK")
</pallas_src>

<mosaic_0001>
module attributes {stable_mosaic.version = 11 : i64} {
  func.func @_fused_addmm_kernel(%arg0: i32, %arg1: i32, %arg2: i32, %arg3: memref<8x128xf32, #tpu.memory_space<vmem>>, %arg4: memref<8x128xf32, #tpu.memory_space<vmem>>, %arg5: memref<128x128xf32, #tpu.memory_space<vmem>>, %arg6: memref<8x128xf32, #tpu.memory_space<vmem>>, %arg7: memref<8x128xf32, #tpu.memory_space<vmem>>, %arg8: memref<8x128xf32, #tpu.memory_space<vmem>>) attributes {dimension_semantics = [#tpu.dimension_semantics<parallel>, #tpu.dimension_semantics<parallel>, #tpu.dimension_semantics<arbitrary>], iteration_bounds = array<i64: 1, 1, 1>, scalar_prefetch = 0 : i64, scratch_operands = 1 : i64, tpu.core_type = #tpu.core_type<tc>, window_params = [{transform_indices = @transform_0, window_bounds = array<i64: 8, 128>}, {transform_indices = @transform_1, window_bounds = array<i64: 8, 128>}, {transform_indices = @transform_2, window_bounds = array<i64: 128, 128>}, {transform_indices = @transform_3, window_bounds = array<i64: 8, 128>}, {transform_indices = @transform_4, window_bounds = array<i64: 8, 128>}]} {
    %c0_i32 = arith.constant 0 : i32
    %0 = arith.cmpi eq, %arg2, %c0_i32 : i32
    %1 = arith.extui %0 : i1 to i32
    %c0_i32_0 = arith.constant 0 : i32
    %2 = arith.cmpi ne, %1, %c0_i32_0 : i32
    scf.if %2 {
      %c0_12 = arith.constant 0 : index
      %c0_13 = arith.constant 0 : index
      %14 = vector.load %arg6[%c0_12, %c0_13] : memref<8x128xf32, #tpu.memory_space<vmem>>, vector<8x128xf32>
      %c0_14 = arith.constant 0 : index
      %c0_15 = arith.constant 0 : index
      %15 = vector.load %arg8[%c0_14, %c0_15] : memref<8x128xf32, #tpu.memory_space<vmem>>, vector<8x128xf32>
      tpu.vector_store %arg8[%c0_14, %c0_15], %14 {strides = array<i32>} : memref<8x128xf32, #tpu.memory_space<vmem>>, vector<8x128xf32>,
    } else {
    }
    %c0 = arith.constant 0 : index
    %c0_1 = arith.constant 0 : index
    %3 = vector.load %arg3[%c0, %c0_1] : memref<8x128xf32, #tpu.memory_space<vmem>>, vector<8x128xf32>
    %c0_2 = arith.constant 0 : index
    %c0_3 = arith.constant 0 : index
    %4 = vector.load %arg4[%c0_2, %c0_3] : memref<8x128xf32, #tpu.memory_space<vmem>>, vector<8x128xf32>
    %5 = arith.addf %3, %4 : vector<8x128xf32>
    %c0_4 = arith.constant 0 : index
    %c0_5 = arith.constant 0 : index
    %6 = vector.load %arg8[%c0_4, %c0_5] : memref<8x128xf32, #tpu.memory_space<vmem>>, vector<8x128xf32>
    %c0_6 = arith.constant 0 : index
    %c0_7 = arith.constant 0 : index
    %7 = vector.load %arg5[%c0_6, %c0_7] : memref<128x128xf32, #tpu.memory_space<vmem>>, vector<128x128xf32>
    %cst = arith.constant dense<0.000000e+00> : vector<8x128xf32>
    %8 = tpu.matmul %5, %7, %cst {dimension_numbers = #tpu.dot_dimension_numbers<[1], [0], [0], [1], [0, 0, 1, 1], [], []>} : vector<8x128xf32>, vector<128x128xf32>, vector<8x128xf32> -> vector<8x128xf32>
    %9 = arith.addf %6, %8 : vector<8x128xf32>
    %c0_8 = arith.constant 0 : index
    %c0_9 = arith.constant 0 : index
    %10 = vector.load %arg8[%c0_8, %c0_9] : memref<8x128xf32, #tpu.memory_space<vmem>>, vector<8x128xf32>
    tpu.vector_store %arg8[%c0_8, %c0_9], %9 {strides = array<i32>} : memref<8x128xf32, #tpu.memory_space<vmem>>, vector<8x128xf32>,
    %c0_i32_10 = arith.constant 0 : i32
    %11 = arith.cmpi eq, %arg2, %c0_i32_10 : i32
    %12 = arith.extui %11 : i1 to i32
    %c0_i32_11 = arith.constant 0 : i32
    %13 = arith.cmpi ne, %12, %c0_i32_11 : i32
    scf.if %13 {
      %c0_12 = arith.constant 0 : index
      %c0_13 = arith.constant 0 : index
      %14 = vector.load %arg8[%c0_12, %c0_13] : memref<8x128xf32, #tpu.memory_space<vmem>>, vector<8x128xf32>
      %c0_14 = arith.constant 0 : index
      %c0_15 = arith.constant 0 : index
      %15 = vector.load %arg7[%c0_14, %c0_15] : memref<8x128xf32, #tpu.memory_space<vmem>>, vector<8x128xf32>
      tpu.vector_store %arg7[%c0_14, %c0_15], %14 {strides = array<i32>} : memref<8x128xf32, #tpu.memory_space<vmem>>, vector<8x128xf32>,
    } else {
    }
    return
  }
  func.func @transform_0(%arg0: i32, %arg1: i32, %arg2: i32) -> (i32, i32) {
    %c0_i32 = arith.constant 0 : i32
    return %arg0, %arg2 : i32, i32
  }
  func.func @transform_1(%arg0: i32, %arg1: i32, %arg2: i32) -> (i32, i32) {
    %c0_i32 = arith.constant 0 : i32
    return %arg0, %arg2 : i32, i32
  }
  func.func @transform_2(%arg0: i32, %arg1: i32, %arg2: i32) -> (i32, i32) {
    %c0_i32 = arith.constant 0 : i32
    return %arg2, %arg1 : i32, i32
  }
  func.func @transform_3(%arg0: i32, %arg1: i32, %arg2: i32) -> (i32, i32) {
    %c0_i32 = arith.constant 0 : i32
    return %arg0, %arg1 : i32, i32
  }
  func.func @transform_4(%arg0: i32, %arg1: i32, %arg2: i32) -> (i32, i32) {
    %c0_i32 = arith.constant 0 : i32
    return %arg0, %arg1 : i32, i32
  }
}

</mosaic_0001>

<bundles_post_ra>
// kernel: tpu_custom_call.1
= control target key start
LH: loop header
LB: loop body
LE: loop exit
PB: predicated region body
PF: predicated region fallthrough
CT: control target
= control target key end

     0   :  { %9 = vsyncpa [#allocation4], 0  ;;  %s438_s0 = inlined_call_operand.hbm [shape: f32[8,128], index: 0, kind: input, shape index: {}]   ;;  %s439_s1 = inlined_call_operand.hbm [shape: f32[8,128], index: 1, kind: input, shape index: {}]   ;;  %s440_s2 = inlined_call_operand.hbm [shape: f32[128,128], index: 2, kind: input, shape index: {}]   ;;  %s441_s3 = inlined_call_operand.vmem [shape: f32[8,128], index: 3, kind: input, shape index: {}]   ;;  %s442_s4 = inlined_call_operand.hbm [shape: f32[8,128], index: 4, kind: output, shape index: {}]  }
   0x1   :  { %10 = vsyncpa [#allocation7], 0 }
   0x2   :  { %11 = vsyncpa [#allocation5], 0  ;;  %s353_s15 = smov [#allocation6]   ;;  %s354_s17 = smov [#allocation3]  }
   0x3   :  { %s28_s16 = sshll.u32 %s353_s15, 4  ;;  %s18_s18 = sshll.u32 %s354_s17, 4  ;;  %s29_s16 = int_to_ptr.vmem [resolvable:$true] %s28_s16  ;;  %s19_s18 = int_to_ptr.vmem [resolvable:$true] %s18_s18 }
   0x4   :  { %s259_s21 = scalar_lea.hbm %s439_s1, 128 }
   0x5   :  { %p260_p0 = scmp.ne.s32.totalorder %s439_s1, %s259_s21  ;;  %p263_p1 = scmp.lt.u32.totalorder %s259_s21, %s439_s1 }
   0x7   :  { %p265_p2 = pnand %p263_p1, %p260_p0 }
   0x9   :  { %268 = shalt.err (!%p265_p2)
}
   0xa   :  { %s269_s26 = scalar_lea.vmem %s29_s16, 128  ;;  %p274_p4 = scmp.lt.s32.totalorder %s29_s16, %s29_s16 }
   0xb   :  { %p270_p3 = scmp.ne.s32.totalorder %s29_s16, %s269_s26  ;;  %p275_p5 = scmp.lt.s32.totalorder %s269_s26, %s269_s26 }
   0xd   :  { %p276_p6 = por %p275_p5, %p274_p4 }
   0xf   :  { %p277_p7 = pnand %p276_p6, %p270_p3 }
  0x11   :  { %280 = shalt.err (!%p277_p7)
}
  0x12   :  { %31 = dma.hbm_to_vmem [thread:$0]  %s439_s1, 128, %s29_s16, [#allocation7]  }
  0x13   :  { %s281_s5 = scalar_lea.hbm %s438_s0, 128 }
  0x14   :  { %p282_p8 = scmp.ne.s32.totalorder %s438_s0, %s281_s5  ;;  %p285_p9 = scmp.lt.u32.totalorder %s281_s5, %s438_s0 }
  0x16   :  { %p287_p10 = pnand %p285_p9, %p282_p8 }
  0x18   :  { %290 = shalt.err (!%p287_p10)
}
  0x19   :  { %s291_s10 = scalar_lea.vmem %s19_s18, 128  ;;  %p296_p12 = scmp.lt.s32.totalorder %s19_s18, %s19_s18 }
  0x1a   :  { %p292_p11 = scmp.ne.s32.totalorder %s19_s18, %s291_s10  ;;  %p297_p13 = scmp.lt.s32.totalorder %s291_s10, %s291_s10 }
  0x1c   :  { %p298_p0 = por %p297_p13, %p296_p12 }
  0x1e   :  { %p299_p1 = pnand %p298_p0, %p292_p11 }
  0x20   :  { %302 = shalt.err (!%p299_p1)
}
  0x21   :  { %21 = dma.hbm_to_vmem [thread:$0]  %s438_s0, 128, %s19_s18, [#allocation4]  }
  0x22   :  { %s355_s12 = smov [#allocation8]   ;;  %s303_s16 = scalar_lea.hbm %s440_s2, 2048 }
  0x23   :  { %s37_s13 = sshll.u32 %s355_s12, 4  ;;  %p304_p2 = scmp.ne.s32.totalorder %s440_s2, %s303_s16  ;;  %s38_s13 = int_to_ptr.vmem [resolvable:$true] %s37_s13 }
  0x24   :  { %p307_p3 = scmp.lt.u32.totalorder %s303_s16, %s440_s2 }
  0x26   :  { %p309_p4 = pnand %p307_p3, %p304_p2 }
  0x28   :  { %312 = shalt.err (!%p309_p4)
}
  0x29   :  { %s313_s22 = scalar_lea.vmem %s38_s13, 2048  ;;  %p318_p6 = scmp.lt.s32.totalorder %s38_s13, %s38_s13 }
  0x2a   :  { %p314_p5 = scmp.ne.s32.totalorder %s38_s13, %s313_s22  ;;  %p319_p7 = scmp.lt.s32.totalorder %s313_s22, %s313_s22 }
  0x2c   :  { %p320_p8 = por %p319_p7, %p318_p6 }
  0x2e   :  { %p321_p9 = pnand %p320_p8, %p314_p5 }
  0x30   :  { %324 = shalt.err (!%p321_p9)
}
  0x31   :  { %s356_s0 = smov 128   ;;  %s357_s18 = smov 8  }
  0x32   :  { %43 = dma.hbm_to_vmem [thread:$0]  %s440_s2, 2048, %s38_s13, [#allocation7], %s356_s0, %s356_s0, %s357_s18  }
  0x33   :  { %347 = dma.done.wait [#allocation4], 128  }
  0x34   :  { %348 = vsyncadd [#allocation4], 4294967168 }
  0x35   :  { %349 = dma.done.wait [#allocation7], 2176  }
  0x36   :  { %350 = vsyncadd [#allocation7], 4294965120  ;;  %v358_v0 = vmov 0.0|0.0   ;;  %vm359_vm0 = vmmov 0   ;;  %v360_v1 = vmov 0.0   ;;  %v65_v2 = vld [vmem:[#allocation8] sm:$0xff] }
  0x37   :  { %226 = vmatprep.subr.bf16.mxu0 %v358_v0  ;;  %223 = vmatprep.mubr.msk.f32.mxu0 %vm359_vm0, %v360_v1  ;;  %v66_v3 = vld [vmem:[#allocation8 + $0x8] sm:$0xff]  ;;  %v67_v4 = vld [vmem:[#allocation8 + $0x10] sm:$0xff]  ;;  %v68_v6 = vld [vmem:[#allocation8 + $0x18] sm:$0xff]  ;;  %s361_s26 = smov [#allocation9]  }
  0x38   :  { %v227_v5 = vpack.c.bf16 %v66_v3, %v65_v2  ;;  %v230_v7 = vpack.c.bf16 %v68_v6, %v67_v4  ;;  %v69_v8 = vld [vmem:[#allocation8 + $0x20] sm:$0xff]  ;;  %v70_v9 = vld [vmem:[#allocation8 + $0x28] sm:$0xff]  ;;  %v71_v11 = vld [vmem:[#allocation8 + $0x30] sm:$0xff]  ;;  %s164_s27 = sshll.u32 %s361_s26, 4  ;;  %s165_s27 = int_to_ptr.vmem [resolvable:$true] %s164_s27 }
  0x39   :  { %v233_v10 = vpack.c.bf16 %v70_v9, %v69_v8  ;;  %v72_v12 = vld [vmem:[#allocation8 + $0x38] sm:$0xff]  ;;  %v73_v14 = vld [vmem:[#allocation8 + $0x40] sm:$0xff]  ;;  %v74_v15 = vld [vmem:[#allocation8 + $0x48] sm:$0xff]  ;;  %s325_s28 = scalar_lea.vmem %s165_s27, 128  ;;  %p330_p11 = scmp.lt.s32.totalorder %s165_s27, %s165_s27 }
  0x3a   :  { %228 = vmatpush3.bf16.msra.mxu0 %v227_v5  ;;  %v236_v13 = vpack.c.bf16 %v72_v12, %v71_v11  ;;  %v239_v16 = vpack.c.bf16 %v74_v15, %v73_v14  ;;  %v75_v17 = vld [vmem:[#allocation8 + $0x50] sm:$0xff]  ;;  %v76_v18 = vld [vmem:[#allocation8 + $0x58] sm:$0xff]  ;;  %v77_v20 = vld [vmem:[#allocation8 + $0x60] sm:$0xff]  ;;  %p326_p10 = scmp.ne.s32.totalorder %s165_s27, %s325_s28  ;;  %p331_p12 = scmp.lt.s32.totalorder %s325_s28, %s325_s28 }
  0x3b   :  { %229 = vmatprep.subr.bf16.mxu0 %v358_v0  ;;  %v242_v19 = vpack.c.bf16 %v76_v18, %v75_v17  ;;  %v78_v21 = vld [vmem:[#allocation8 + $0x68] sm:$0xff]  ;;  %v79_v23 = vld [vmem:[#allocation8 + $0x70] sm:$0xff]  ;;  %v80_v24 = vld [vmem:[#allocation8 + $0x78] sm:$0xff] }
  0x3c   :  { %v245_v22 = vpack.c.bf16 %v78_v21, %v77_v20  ;;  %v248_v25 = vpack.c.bf16 %v80_v24, %v79_v23  ;;  %v61_v26 = vld [vmem:[#allocation3] sm:$0xff]  ;;  %v62_v27 = vld [vmem:[#allocation6] sm:$0xff]  ;;  %p332_p13 = por %p331_p12, %p330_p11 }
  0x3d   :  { %v63_v28 = vadd.f32 %v62_v27, %v61_v26  ;;  %v59_v29 = vld [vmem:[%s441_s3] sm:$0xff] }
  0x3e   :  { %231 = vmatpush3.bf16.msra.mxu0 %v230_v7  ;;  %p333_p0 = pnand %p332_p13, %p326_p10 }
  0x3f   :  { %232 = vmatprep.subr.bf16.mxu0 %v358_v0 }
  0x42   :  { %234 = vmatpush3.bf16.msra.mxu0 %v233_v10 }
  0x43   :  { %235 = vmatprep.subr.bf16.mxu0 %v358_v0 }
  0x46   :  { %237 = vmatpush3.bf16.msra.mxu0 %v236_v13 }
  0x47   :  { %238 = vmatprep.subr.bf16.mxu0 %v358_v0 }
  0x4a   :  { %240 = vmatpush3.bf16.msra.mxu0 %v239_v16 }
  0x4b   :  { %241 = vmatprep.subr.bf16.mxu0 %v358_v0 }
  0x4e   :  { %243 = vmatpush3.bf16.msra.mxu0 %v242_v19 }
  0x4f   :  { %244 = vmatprep.subr.bf16.mxu0 %v358_v0 }
  0x52   :  { %246 = vmatpush3.bf16.msra.mxu0 %v245_v22 }
  0x53   :  { %247 = vmatprep.subr.bf16.mxu0 %v358_v0 }
  0x56   :  { %249 = vmatpush3.bf16.msra.mxu0 %v248_v25 }
  0x59   :  { %224 = vmatmul.mubr.f32.vlgmr.msra.gmra.mrb[0].mxu0 %v63_v28 }
 0x12c   :  { %v147_v30 = vpop.f32.mrb[0].mxu0 }
 0x12d   :  { %v151_v31 = vadd.f32 %v147_v30, %v59_v29  ;;  %v225_v32 = vpop.f32.mrb[1].mxu0 }
 0x12f   :  { %157 = vst [vmem:[#allocation9] sm:$0xff] %v151_v31 }
 0x130   :  { %336 = shalt.err (!%p333_p0)
}
 0x131   :  { %s337_s5 = scalar_lea.hbm %s442_s4, 128 }
 0x132   :  { %p338_p1 = scmp.ne.s32.totalorder %s442_s4, %s337_s5  ;;  %p341_p2 = scmp.lt.u32.totalorder %s337_s5, %s442_s4 }
 0x134   :  { %p343_p3 = pnand %p341_p2, %p338_p1 }
 0x136   :  { %346 = shalt.err (!%p343_p3)
}
 0x137   :  { %167 = dma.vmem_to_hbm [thread:$0]  %s165_s27, 128, %s442_s4, [#allocation5]  }
 0x138   :  { %351 = dma.done.wait [#allocation5], 128  }
 0x139   :  { %352 = vsyncadd [#allocation5], 4294967168 }
 0x13a   :  { %171 = vsyncpa [#allocation4], 1 }
 0x13b   :  { %172 = vsyncpa [#allocation7], 1 }
 0x13c   :  { %173 = vsyncpa [#allocation5], 1 }

</bundles_post_ra>
